<compile_context>
chip_gen: v7x
topology: tpu7x:2x2x1
jax: 0.10.0
libtpu: 0.0.40
codegen_flags: <defaults>
</compile_context>

<pallas_src>
import functools

import jax
import jax.numpy as jnp
from jax.experimental import pallas as pl
from jax.experimental.pallas import tpu as pltpu


def _cross_attn_kernel(q_ref, k_ref, v_ref,
                       wq_ref, wk_ref, wv_ref, wo_ref, b_ref,
                       o_ref, *, compute_dtype):
    BT, Tq, D = q_ref.shape
    Tk = k_ref.shape[1]
    cd = compute_dtype

    # Flatten (BT, T, D) -> (BT*T, D) while still in the input dtype (f32
    # sublane tile of 8 makes the collapse free for Tq/Tk multiples of 8),
    # then cast so every projection matmul feeds M = BT*T rows of bf16 to the
    # MXU.
    qf = q_ref[...].reshape(BT * Tq, D).astype(cd)
    kf = k_ref[...].reshape(BT * Tk, D).astype(cd)
    vf = v_ref[...].reshape(BT * Tk, D).astype(cd)

    # Weights arrive pre-transposed and already in the compute dtype:
    # no in-kernel casts, half the DMA bytes.
    wq = wq_ref[...]
    wk = wk_ref[...]
    wv = wv_ref[...]
    wo = wo_ref[...]

    # Packed biases (f32): row 0 = bq * 1/sqrt(D), 1 = bk, 2 = bv, 3 = bo.
    bq = b_ref[0:1, :]
    bk = b_ref[1:2, :]
    bv = b_ref[2:3, :]
    bo = b_ref[3:4, :]

    # Projections: large-M matmuls, f32 accumulation.  The 1/sqrt(D) softmax
    # scale is already folded into wq / bq by prepare_params.
    Q = jnp.dot(qf, wq, preferred_element_type=jnp.float32) + bq
    K = jnp.dot(kf, wk, preferred_element_type=jnp.float32) + bk
    V = jnp.dot(vf, wv, preferred_element_type=jnp.float32) + bv

    # Reshape in f32 (free leading-dim split), then cast so the attention-core
    # matmuls also run on the fast compute-dtype MXU path.
    Qc = Q.reshape(BT, Tq, D).astype(cd)
    Kc = K.reshape(BT, Tk, D).astype(cd)
    Vc = V.reshape(BT, Tk, D).astype(cd)

    # Scores: contract the last axis of both operands -> no K transpose
    # materialized.
    scores = jnp.einsum('bqd,bkd->bqk', Qc, Kc,
                        preferred_element_type=jnp.float32)       # (BT, Tq, Tk)

    # Max-stabilized softmax with deferred normalization.
    m = jnp.max(scores, axis=-1, keepdims=True)
    e = jnp.exp(scores - m)                                        # (BT, Tq, Tk)
    denom = jnp.sum(e, axis=-1, keepdims=True)                     # (BT, Tq, 1)

    # Un-normalized context, then one EUP reciprocal scale over (BT, Tq, D).
    ctx = jnp.einsum('bqk,bkd->bqd', e.astype(cd), Vc,
                     preferred_element_type=jnp.float32)           # (BT, Tq, D)
    ctx = ctx * pl.reciprocal(denom, approx=True)

    # Output projection as one large-M matmul.
    ctx_f = ctx.reshape(BT * Tq, D).astype(cd)
    out = jnp.dot(ctx_f, wo, preferred_element_type=jnp.float32) + bo

    o_ref[...] = out.reshape(BT, Tq, D).astype(o_ref.dtype)


def prepare_params(params, param_dtype=None):
    """One-time parameter transform (outside the hot path).

    params: torch-style (wq, bq, wk, bk, wv, bv, wo, bo), weights shaped (out, in).
    Returns (wq_t, wk_t, wv_t, wo_t, biases):
      * weights transposed to (in, out) and cast to `param_dtype` (bf16 by
        default when the torch params are f32),
      * the 1/sqrt(D) softmax scale folded into wq_t / bq,
      * biases packed into a single (4, D) float32 array.
    """
    wq, bq, wk, bk, wv, bv, wo, bo = params
    D = wq.shape[0]
    if param_dtype is None:
        param_dtype = jnp.bfloat16 if wq.dtype == jnp.float32 else wq.dtype
    scale = 1.0 / float(D) ** 0.5
    wq_t = (wq.T * scale).astype(param_dtype)
    wk_t = wk.T.astype(param_dtype)
    wv_t = wv.T.astype(param_dtype)
    wo_t = wo.T.astype(param_dtype)
    biases = jnp.stack([bq * scale, bk, bv, bo], axis=0).astype(jnp.float32)
    return wq_t, wk_t, wv_t, wo_t, biases


def _vmem_bytes_estimate(bt, Tq, Tk, D, in_bytes, out_bytes, w_bytes, cd_bytes):
    """Rough per-step VMEM working-set estimate (double-buffered blocks +
    params + in-kernel intermediates)."""
    T = max(Tq, Tk)
    io = 2 * ((bt * Tq * D + 2 * bt * Tk * D) * in_bytes + bt * Tq * D * out_bytes)
    params = 2 * (4 * D * D * w_bytes + 4 * D * 4)
    inter_f32 = 4 * (3 * bt * T * D + 2 * bt * Tq * Tk + 2 * bt * Tq * D)
    inter_cd = cd_bytes * (3 * bt * T * D + bt * Tq * Tk + bt * Tq * D)
    return io + params + inter_f32 + inter_cd


def _pick_batch_tile(B, Tq, Tk, D, in_bytes, out_bytes, w_bytes, cd_bytes,
                     m_target=1024, vmem_budget=24 * 1024 * 1024):
    """Largest divisor of B whose projection M (= bt*T) stays around m_target
    rows and whose working set fits the VMEM budget; then shrunk (if possible)
    so the 'parallel' grid has >= 2 steps for the two v7x TensorCores."""
    T = max(Tq, Tk, 1)
    divisors = [d for d in range(1, B + 1) if B % d == 0]
    best = 1
    for d in divisors:
        if d > 1 and d * T > m_target:
            continue
        if _vmem_bytes_estimate(d, Tq, Tk, D, in_bytes, out_bytes,
                                w_bytes, cd_bytes) > vmem_budget:
            continue
        best = d
    # Keep at least 2 grid steps when the batch allows it (v7x megacore).
    while best > 1 and (B // best) < 2:
        best = max(d for d in divisors if d < best)
    return best


def cross_scale_attention(q, k, v, prepped, *, batch_tile=None, compute_dtype=None):
    """q: (B, Tq, D); k, v: (B, Tk, D); prepped = prepare_params(torch_params)."""
    wq_t, wk_t, wv_t, wo_t, biases = prepped
    B, Tq, D = q.shape
    Tk = k.shape[1]

    if compute_dtype is None:
        # Weights are stored in the compute dtype (bf16 by default): full-rate
        # MXU on v5e/v6e/v7x, with f32 accumulation inside the kernel.
        compute_dtype = wq_t.dtype

    if batch_tile is None:
        batch_tile = _pick_batch_tile(
            B, Tq, Tk, D,
            in_bytes=jnp.dtype(q.dtype).itemsize,
            out_bytes=jnp.dtype(q.dtype).itemsize,
            w_bytes=jnp.dtype(wq_t.dtype).itemsize,
            cd_bytes=jnp.dtype(compute_dtype).itemsize)
    assert B % batch_tile == 0, "batch_tile must divide B"
    grid = (B // batch_tile,)

    kernel = functools.partial(_cross_attn_kernel, compute_dtype=compute_dtype)

    weight_spec = pl.BlockSpec((D, D), lambda b: (0, 0))
    bias_spec = pl.BlockSpec((4, D), lambda b: (0, 0))

    return pl.pallas_call(
        kernel,
        out_shape=jax.ShapeDtypeStruct((B, Tq, D), q.dtype),
        grid_spec=pltpu.PrefetchScalarGridSpec(
            num_scalar_prefetch=0,
            grid=grid,
            in_specs=[
                pl.BlockSpec((batch_tile, Tq, D), lambda b: (b, 0, 0)),  # q
                pl.BlockSpec((batch_tile, Tk, D), lambda b: (b, 0, 0)),  # k
                pl.BlockSpec((batch_tile, Tk, D), lambda b: (b, 0, 0)),  # v
                weight_spec,   # Wq^T (scaled)
                weight_spec,   # Wk^T
                weight_spec,   # Wv^T
                weight_spec,   # Wo^T
                bias_spec,     # packed (4, D) biases
            ],
            out_specs=pl.BlockSpec((batch_tile, Tq, D), lambda b: (b, 0, 0)),
        ),
        compiler_params=pltpu.CompilerParams(
            dimension_semantics=("parallel",),
            # Explicit, generation-safe scoped-VMEM limit (v5e defaults to only
            # 16 MiB scoped; v7x has 64 MiB physical VMEM).
            vmem_limit_bytes=32 * 1024 * 1024,
        ),
    )(q, k, v, wq_t, wk_t, wv_t, wo_t, biases)


def cross_scale_attention_ref(q, k, v, params):
    """Pure-JAX f32 reference mirroring the PyTorch forward (torch-style weights)."""
    wq, bq, wk, bk, wv, bv, wo, bo = params
    D = q.shape[-1]
    Q = jnp.einsum('btd,od->bto', q, wq) + bq
    K = jnp.einsum('btd,od->bto', k, wk) + bk
    V = jnp.einsum('btd,od->bto', v, wv) + bv
    scores = jnp.einsum('bqd,bkd->bqk', Q, K) / jnp.sqrt(jnp.float32(D))
    attn = jax.nn.softmax(scores, axis=-1)
    ctx = jnp.einsum('bqk,bkd->bqd', attn, V)
    return jnp.einsum('bqd,od->bqo', ctx, wo) + bo


if __name__ == "__main__":
    B, Tq, Tk, D = 2, 8, 8, 32

    key = jax.random.PRNGKey(0)
    keys = jax.random.split(key, 11)

    q = jax.random.normal(keys[0], (B, Tq, D), dtype=jnp.float32)
    k = jax.random.normal(keys[1], (B, Tk, D), dtype=jnp.float32)
    v = jax.random.normal(keys[2], (B, Tk, D), dtype=jnp.float32)

    lim = 1.0 / float(D) ** 0.5

    def linear_init(kw, kb):
        w = jax.random.uniform(kw, (D, D), minval=-lim, maxval=lim, dtype=jnp.float32)
        b = jax.random.uniform(kb, (D,), minval=-lim, maxval=lim, dtype=jnp.float32)
        return w, b

    wq, bq = linear_init(keys[3], keys[4])
    wk, bk = linear_init(keys[5], keys[6])
    wv, bv = linear_init(keys[7], keys[8])
    wo, bo = linear_init(keys[9], keys[10])
    params = (wq, bq, wk, bk, wv, bv, wo, bo)

    prepped = prepare_params(params)   # done once, outside the hot path

    out = cross_scale_attention(q, k, v, prepped)
    out = jax.block_until_ready(out)

    ref = cross_scale_attention_ref(q, k, v, params)
    assert out.shape == (B, Tq, D)

    # bf16 compute (the default when params are f32) needs a looser tolerance.
    tol = 5e-2 if prepped[0].dtype == jnp.bfloat16 else 1e-4
    err = float(jnp.max(jnp.abs(out - ref)))
    assert jnp.allclose(out, ref, atol=tol, rtol=tol), f"max abs err {err}"

    print("KERNEL_OK")
</pallas_src>

<mosaic_0001>
module attributes {stable_mosaic.version = 11 : i64} {
  func.func @_cross_attn_kernel(%arg0: i32, %arg1: memref<1x8x32xf32, #tpu.memory_space<vmem>>, %arg2: memref<1x8x32xf32, #tpu.memory_space<vmem>>, %arg3: memref<1x8x32xf32, #tpu.memory_space<vmem>>, %arg4: memref<32x32xbf16, #tpu.memory_space<vmem>>, %arg5: memref<32x32xbf16, #tpu.memory_space<vmem>>, %arg6: memref<32x32xbf16, #tpu.memory_space<vmem>>, %arg7: memref<32x32xbf16, #tpu.memory_space<vmem>>, %arg8: memref<4x32xf32, #tpu.memory_space<vmem>>, %arg9: memref<1x8x32xf32, #tpu.memory_space<vmem>>) attributes {dimension_semantics = [#tpu.dimension_semantics<parallel>], iteration_bounds = array<i64: 2>, scalar_prefetch = 0 : i64, scratch_operands = 0 : i64, tpu.core_type = #tpu.core_type<tc>, window_params = [{transform_indices = @transform_0, window_bounds = array<i64: 1, 8, 32>}, {transform_indices = @transform_1, window_bounds = array<i64: 1, 8, 32>}, {transform_indices = @transform_2, window_bounds = array<i64: 1, 8, 32>}, {pipeline_mode = #tpu.pipeline_mode<synchronous>, transform_indices = @transform_3, window_bounds = array<i64: 32, 32>}, {pipeline_mode = #tpu.pipeline_mode<synchronous>, transform_indices = @transform_4, window_bounds = array<i64: 32, 32>}, {pipeline_mode = #tpu.pipeline_mode<synchronous>, transform_indices = @transform_5, window_bounds = array<i64: 32, 32>}, {pipeline_mode = #tpu.pipeline_mode<synchronous>, transform_indices = @transform_6, window_bounds = array<i64: 32, 32>}, {pipeline_mode = #tpu.pipeline_mode<synchronous>, transform_indices = @transform_7, window_bounds = array<i64: 4, 32>}, {transform_indices = @transform_8, window_bounds = array<i64: 1, 8, 32>}]} {
    %c0 = arith.constant 0 : index
    %c0_0 = arith.constant 0 : index
    %c0_1 = arith.constant 0 : index
    %0 = vector.load %arg1[%c0, %c0_0, %c0_1] : memref<1x8x32xf32, #tpu.memory_space<vmem>>, vector<1x8x32xf32>
    %1 = vector.shape_cast %0 : vector<1x8x32xf32> to vector<8x32xf32>
    %2 = arith.truncf %1 : vector<8x32xf32> to vector<8x32xbf16>
    %c0_2 = arith.constant 0 : index
    %c0_3 = arith.constant 0 : index
    %c0_4 = arith.constant 0 : index
    %3 = vector.load %arg2[%c0_2, %c0_3, %c0_4] : memref<1x8x32xf32, #tpu.memory_space<vmem>>, vector<1x8x32xf32>
    %4 = vector.shape_cast %3 : vector<1x8x32xf32> to vector<8x32xf32>
    %5 = arith.truncf %4 : vector<8x32xf32> to vector<8x32xbf16>
    %c0_5 = arith.constant 0 : index
    %c0_6 = arith.constant 0 : index
    %c0_7 = arith.constant 0 : index
    %6 = vector.load %arg3[%c0_5, %c0_6, %c0_7] : memref<1x8x32xf32, #tpu.memory_space<vmem>>, vector<1x8x32xf32>
    %7 = vector.shape_cast %6 : vector<1x8x32xf32> to vector<8x32xf32>
    %8 = arith.truncf %7 : vector<8x32xf32> to vector<8x32xbf16>
    %c0_8 = arith.constant 0 : index
    %c0_9 = arith.constant 0 : index
    %9 = vector.load %arg4[%c0_8, %c0_9] : memref<32x32xbf16, #tpu.memory_space<vmem>>, vector<32x32xbf16>
    %c0_10 = arith.constant 0 : index
    %c0_11 = arith.constant 0 : index
    %10 = vector.load %arg5[%c0_10, %c0_11] : memref<32x32xbf16, #tpu.memory_space<vmem>>, vector<32x32xbf16>
    %c0_12 = arith.constant 0 : index
    %c0_13 = arith.constant 0 : index
    %11 = vector.load %arg6[%c0_12, %c0_13] : memref<32x32xbf16, #tpu.memory_space<vmem>>, vector<32x32xbf16>
    %c0_14 = arith.constant 0 : index
    %c0_15 = arith.constant 0 : index
    %12 = vector.load %arg7[%c0_14, %c0_15] : memref<32x32xbf16, #tpu.memory_space<vmem>>, vector<32x32xbf16>
    %c0_16 = arith.constant 0 : index
    %c0_17 = arith.constant 0 : index
    %13 = vector.load %arg8[%c0_16, %c0_17] : memref<4x32xf32, #tpu.memory_space<vmem>>, vector<1x32xf32>
    %c1 = arith.constant 1 : index
    %c0_18 = arith.constant 0 : index
    %14 = vector.load %arg8[%c1, %c0_18] : memref<4x32xf32, #tpu.memory_space<vmem>>, vector<1x32xf32>
    %c2 = arith.constant 2 : index
    %c0_19 = arith.constant 0 : index
    %15 = vector.load %arg8[%c2, %c0_19] : memref<4x32xf32, #tpu.memory_space<vmem>>, vector<1x32xf32>
    %c3 = arith.constant 3 : index
    %c0_20 = arith.constant 0 : index
    %16 = vector.load %arg8[%c3, %c0_20] : memref<4x32xf32, #tpu.memory_space<vmem>>, vector<1x32xf32>
    %cst = arith.constant dense<0.000000e+00> : vector<8x32xf32>
    %17 = tpu.matmul %2, %9, %cst {dimension_numbers = #tpu.dot_dimension_numbers<[1], [0], [0], [1], [0, 0, 1, 1], [], []>} : vector<8x32xbf16>, vector<32x32xbf16>, vector<8x32xf32> -> vector<8x32xf32>
    %18 = vector.broadcast %13 : vector<1x32xf32> to vector<8x32xf32>
    %19 = arith.addf %17, %18 : vector<8x32xf32>
    %cst_21 = arith.constant dense<0.000000e+00> : vector<8x32xf32>
    %20 = tpu.matmul %5, %10, %cst_21 {dimension_numbers = #tpu.dot_dimension_numbers<[1], [0], [0], [1], [0, 0, 1, 1], [], []>} : vector<8x32xbf16>, vector<32x32xbf16>, vector<8x32xf32> -> vector<8x32xf32>
    %21 = vector.broadcast %14 : vector<1x32xf32> to vector<8x32xf32>
    %22 = arith.addf %20, %21 : vector<8x32xf32>
    %cst_22 = arith.constant dense<0.000000e+00> : vector<8x32xf32>
    %23 = tpu.matmul %8, %11, %cst_22 {dimension_numbers = #tpu.dot_dimension_numbers<[1], [0], [0], [1], [0, 0, 1, 1], [], []>} : vector<8x32xbf16>, vector<32x32xbf16>, vector<8x32xf32> -> vector<8x32xf32>
    %24 = vector.broadcast %15 : vector<1x32xf32> to vector<8x32xf32>
    %25 = arith.addf %23, %24 : vector<8x32xf32>
    %26 = vector.shape_cast %19 : vector<8x32xf32> to vector<1x8x32xf32>
    %27 = arith.truncf %26 : vector<1x8x32xf32> to vector<1x8x32xbf16>
    %28 = vector.shape_cast %22 : vector<8x32xf32> to vector<1x8x32xf32>
    %29 = arith.truncf %28 : vector<1x8x32xf32> to vector<1x8x32xbf16>
    %30 = vector.shape_cast %25 : vector<8x32xf32> to vector<1x8x32xf32>
    %31 = arith.truncf %30 : vector<1x8x32xf32> to vector<1x8x32xbf16>
    "tpu.trace_start"() <{level = 10 : i32, message = "bqd,bkd->bqk"}> : () -> ()
    %cst_23 = arith.constant dense<0.000000e+00> : vector<1x8x8xf32>
    %32 = tpu.matmul %27, %29, %cst_23 {dimension_numbers = #tpu.dot_dimension_numbers<[2], [2], [1], [1], [0, 0, 0, 1, 1, 1], [0], [0]>} : vector<1x8x32xbf16>, vector<1x8x32xbf16>, vector<1x8x8xf32> -> vector<1x8x8xf32>
    "tpu.trace_stop"() : () -> ()
    %cst_24 = arith.constant dense<0xFF800000> : vector<1x8xf32>
    %33 = vector.multi_reduction <maximumf>, %32, %cst_24 [2] : vector<1x8x8xf32> to vector<1x8xf32>
    %34 = vector.shape_cast %33 : vector<1x8xf32> to vector<1x8x1xf32>
    %35 = vector.broadcast %34 : vector<1x8x1xf32> to vector<1x8x8xf32>
    %36 = arith.subf %32, %35 : vector<1x8x8xf32>
    %37 = math.exp %36 : vector<1x8x8xf32>
    %cst_25 = arith.constant dense<0.000000e+00> : vector<1x8xf32>
    %38 = vector.multi_reduction <add>, %37, %cst_25 [2] : vector<1x8x8xf32> to vector<1x8xf32>
    %39 = vector.shape_cast %38 : vector<1x8xf32> to vector<1x8x1xf32>
    %40 = arith.truncf %37 : vector<1x8x8xf32> to vector<1x8x8xbf16>
    "tpu.trace_start"() <{level = 10 : i32, message = "bqk,bkd->bqd"}> : () -> ()
    %cst_26 = arith.constant dense<0.000000e+00> : vector<1x8x32xf32>
    %41 = tpu.matmul %40, %31, %cst_26 {dimension_numbers = #tpu.dot_dimension_numbers<[2], [1], [1], [2], [0, 0, 0, 1, 1, 2], [0], [0]>} : vector<1x8x8xbf16>, vector<1x8x32xbf16>, vector<1x8x32xf32> -> vector<1x8x32xf32>
    "tpu.trace_stop"() : () -> ()
    %42 = tpu.reciprocal %39 {approx = true} : vector<1x8x1xf32> -> vector<1x8x1xf32>
    %43 = vector.broadcast %42 : vector<1x8x1xf32> to vector<1x8x32xf32>
    %44 = arith.mulf %41, %43 : vector<1x8x32xf32>
    %45 = vector.shape_cast %44 : vector<1x8x32xf32> to vector<8x32xf32>
    %46 = arith.truncf %45 : vector<8x32xf32> to vector<8x32xbf16>
    %cst_27 = arith.constant dense<0.000000e+00> : vector<8x32xf32>
    %47 = tpu.matmul %46, %12, %cst_27 {dimension_numbers = #tpu.dot_dimension_numbers<[1], [0], [0], [1], [0, 0, 1, 1], [], []>} : vector<8x32xbf16>, vector<32x32xbf16>, vector<8x32xf32> -> vector<8x32xf32>
    %48 = vector.broadcast %16 : vector<1x32xf32> to vector<8x32xf32>
    %49 = arith.addf %47, %48 : vector<8x32xf32>
    %50 = vector.shape_cast %49 : vector<8x32xf32> to vector<1x8x32xf32>
    %c0_28 = arith.constant 0 : index
    %c0_29 = arith.constant 0 : index
    %c0_30 = arith.constant 0 : index
    %51 = vector.load %arg9[%c0_28, %c0_29, %c0_30] : memref<1x8x32xf32, #tpu.memory_space<vmem>>, vector<1x8x32xf32>
    tpu.vector_store %arg9[%c0_28, %c0_29, %c0_30], %50 {strides = array<i32>} : memref<1x8x32xf32, #tpu.memory_space<vmem>>, vector<1x8x32xf32>,
    return
  }
  func.func @transform_0(%arg0: i32) -> (i32, i32, i32) {
    %c0_i32 = arith.constant 0 : i32
    %c0_i32_0 = arith.constant 0 : i32
    %c0_i32_1 = arith.constant 0 : i32
    return %arg0, %c0_i32, %c0_i32_0 : i32, i32, i32
  }
  func.func @transform_1(%arg0: i32) -> (i32, i32, i32) {
    %c0_i32 = arith.constant 0 : i32
    %c0_i32_0 = arith.constant 0 : i32
    %c0_i32_1 = arith.constant 0 : i32
    return %arg0, %c0_i32, %c0_i32_0 : i32, i32, i32
  }
  func.func @transform_2(%arg0: i32) -> (i32, i32, i32) {
    %c0_i32 = arith.constant 0 : i32
    %c0_i32_0 = arith.constant 0 : i32
    %c0_i32_1 = arith.constant 0 : i32
    return %arg0, %c0_i32, %c0_i32_0 : i32, i32, i32
  }
  func.func @transform_3(%arg0: i32) -> (i32, i32) {
    %c0_i32 = arith.constant 0 : i32
    %c0_i32_0 = arith.constant 0 : i32
    %c0_i32_1 = arith.constant 0 : i32
    return %c0_i32, %c0_i32_0 : i32, i32
  }
  func.func @transform_4(%arg0: i32) -> (i32, i32) {
    %c0_i32 = arith.constant 0 : i32
    %c0_i32_0 = arith.constant 0 : i32
    %c0_i32_1 = arith.constant 0 : i32
    return %c0_i32, %c0_i32_0 : i32, i32
  }
  func.func @transform_5(%arg0: i32) -> (i32, i32) {
    %c0_i32 = arith.constant 0 : i32
    %c0_i32_0 = arith.constant 0 : i32
    %c0_i32_1 = arith.constant 0 : i32
    return %c0_i32, %c0_i32_0 : i32, i32
  }
  func.func @transform_6(%arg0: i32) -> (i32, i32) {
    %c0_i32 = arith.constant 0 : i32
    %c0_i32_0 = arith.constant 0 : i32
    %c0_i32_1 = arith.constant 0 : i32
    return %c0_i32, %c0_i32_0 : i32, i32
  }
  func.func @transform_7(%arg0: i32) -> (i32, i32) {
    %c0_i32 = arith.constant 0 : i32
    %c0_i32_0 = arith.constant 0 : i32
    %c0_i32_1 = arith.constant 0 : i32
    return %c0_i32, %c0_i32_0 : i32, i32
  }
  func.func @transform_8(%arg0: i32) -> (i32, i32, i32) {
    %c0_i32 = arith.constant 0 : i32
    %c0_i32_0 = arith.constant 0 : i32
    %c0_i32_1 = arith.constant 0 : i32
    return %arg0, %c0_i32, %c0_i32_0 : i32, i32, i32
  }
}

</mosaic_0001>

<bundles_post_ra>
// kernel: tpu_custom_call.1
= control target key start
LH: loop header
LB: loop body
LE: loop exit
PB: predicated region body
PF: predicated region fallthrough
CT: control target
= control target key end

     0   :  { %s1869_s0 = inlined_call_operand.hbm [shape: f32[2,8,32], index: 0, kind: input, shape index: {}]   ;;  %s1870_s1 = inlined_call_operand.hbm [shape: f32[2,8,32], index: 1, kind: input, shape index: {}]   ;;  %s1871_s2 = inlined_call_operand.hbm [shape: f32[2,8,32], index: 2, kind: input, shape index: {}]   ;;  %s1872_s3 = inlined_call_operand.hbm [shape: bf16[32,32], index: 3, kind: input, shape index: {}]   ;;  %s1873_s4 = inlined_call_operand.hbm [shape: bf16[32,32], index: 4, kind: input, shape index: {}]   ;;  %s1874_s5 = inlined_call_operand.vmem [shape: bf16[32,32], index: 5, kind: input, shape index: {}]   ;;  %s1875_s6 = inlined_call_operand.hbm [shape: bf16[32,32], index: 6, kind: input, shape index: {}]   ;;  %s1876_s7 = inlined_call_operand.vmem [shape: f32[4,32], index: 7, kind: input, shape index: {}]   ;;  %s1877_s8 = inlined_call_operand.hbm [shape: f32[2,8,32], index: 8, kind: output, shape index: {}]  }
   0x1   :  { %1903 = sst [smem:[#allocation25_spill]] %s1870_s1 }
   0x2   :  { %1904 = sst [smem:[#allocation26_spill]] %s1872_s3 }
   0x3   :  { %1905 = sst [smem:[#allocation27_spill]] %s1877_s8 }
   0x4   :  { %13 = vsyncpa [#allocation3], 0 }
   0x5   :  { %15 = vsyncpa [#allocation3 + $0x1], 0 }
   0x6   :  { %16 = vsyncpa [#allocation6], 0 }
   0x7   :  { %18 = vsyncpa [#allocation6 + $0x1], 0 }
   0x8   :  { %19 = vsyncpa [#allocation9], 0 }
   0x9   :  { %20 = vsyncpa [#allocation12], 0 }
   0xa   :  { %21 = vsyncpa [#allocation4], 0 }
   0xb   :  { %23 = vsyncpa [#allocation4 + $0x1], 0  ;;  %s1482_s27 = smov 0   ;;  %s1484_s28 = smov 0  }
   0xc   :  { %s1486_s29 = smov 0   ;;  %s1488_s30 = smov 0  }
   0xd LB: > { %1906 = sst [smem:[#allocation19_spill]] %s1412_s27  ;;  %s1503_s9 = sadd.s32 4294967295, %s1424_s30   ;;  %s1424_s30 = sphi %s1488_s30, %s1945_s30   ;;  %s1420_s29 = sphi %s1486_s29, %s1949_s29   ;;  %s1416_s28 = sphi %s1484_s28, %s1948_s28   ;;  %s1412_s27 = sphi %s1482_s27, %s1947_s27  }
   0xe   : > { %1907 = sst [smem:[#allocation20_spill]] %s1424_s30  ;;  %s967_s10 = sadd.s32 4294967294, %s1424_s30  }
   0xf   : > { %p49_p0 = scmp.ne.s32.totalorder %s1416_s28, %s1412_s27  ;;  %p1878_p1 = scmp.eq.s32.totalorder %s1503_s9, 0 }
  0x10   : > { %p236_p3 = scmp.eq.s32.totalorder %s967_s10, 1  ;;  %p968_p5 = scmp.ge.s32.totalorder %s1424_s30, 1 }
  0x11   : > { %p1512_p4 = por %p1878_p1, %p49_p0  ;;  %p243_p7 = scmp.lt.s32.totalorder %s1424_s30, 3 }
  0x12   : > { %p1517_p6 = por %p236_p3, %p49_p0  ;;  %s1426_s14 = smov [#allocation8]  }
  0x13   : > { %s1908_s11 = scalar_select %p1512_p4, 1, 0 }
  0x14   : > { %s1909_s12 = scalar_select %p1517_p6, 1, 0 }
  0x15   : > { %p1522_p8 = pnand %p968_p5, %p243_p7  ;;  %s255_s15 = sshll.u32 %s1426_s14, 4  ;;  %s1526_s15 = int_to_ptr.vmem [resolvable:$true] %s255_s15 }
  0x16   : > { %1910 = sst [smem:[#allocation21_spill]] %s1909_s12  ;;  %s1538_s17 = sadd.s32 1, %s1424_s30  }
  0x17   : > { %s1911_s13 = scalar_select %p1522_p8, 1, 0 }
  0x18   : > { %p1089_p9 = pneg %p1522_p8  ;;  %1913 = sst [smem:[#allocation22_spill]] %s1538_s17 }
  0x19   : > { %s36_s18 = sadd.s32 1, %s1420_s29  ;;  %s33_s19 = ssub.s32 %s1424_s30, %s1538_s17 }
  0x1a   : > { %p1533_p11 = pnand %p1089_p9, %p1878_p1  ;;  %s1914_s3 = sld [smem:[#allocation26_spill]] }
  0x1c   : > { %s1912_s16 = scalar_select %p1533_p11, 1, 0 }
  0x1d   : > { %p1551_p13 = pneg %p1533_p11 }
  0x1f   : > { %s1915_s25 = scalar_select %p1551_p13, 1, 0 }
  0x20   : > { %s1172_s22 = scalar_lea.hbm %s1914_s3, 256 }
  0x21   : > { %p1173_p12 = scmp.ne.s32.totalorder %s1914_s3, %s1172_s22  ;;  %p1179_p5 = scmp.lt.u32.totalorder %s1172_s22, %s1914_s3 }
  0x23   : > { %p1175_p0 = pnand %p1551_p13, %p1173_p12 }
  0x25   : > { %p1176_p3 = pneg %p1175_p0 }
  0x27   : > { %p1181_p7 = pnand %p1179_p5, %p1176_p3 }
  0x29   : > { %1184 = shalt.err (!%p1181_p7)
}
  0x2a   : > { %s1185_s14 = scalar_lea.vmem %s1526_s15, 256  ;;  %p1193_p2 = scmp.lt.s32.totalorder %s1526_s15, %s1526_s15 }
  0x2b   : > { %p1186_p9 = scmp.ne.s32.totalorder %s1526_s15, %s1185_s14  ;;  %p1194_p6 = scmp.lt.s32.totalorder %s1185_s14, %s1185_s14 }
  0x2d   : > { %p1188_p10 = pnand %p1186_p9, %p1551_p13  ;;  %p1195_p12 = por %p1194_p6, %p1193_p2 }
  0x2f   : > { %p1189_p1 = pneg %p1188_p10 }
  0x31   : > { %p1196_p0 = pnand %p1195_p12, %p1189_p1 }
  0x33   : > { %1199 = shalt.err (!%p1196_p0)
}
  0x34   : > { %s1881_s20 = smov 64   ;;  %s1883_s21 = smov 4  }
  0x35   : > { %1092 = dma.hbm_to_vmem [thread:$0]  (!%p1533_p11), %s1914_s3, 256, %s1526_s15, [#allocation9], %s1881_s20, %s1881_s20, %s1883_s21  }
  0x36   : > { %p34_p1 = scmp.eq.s32.totalorder %s33_s19, 0  ;;  %p43_p2 = scmp.ne.s32.totalorder %s1420_s29, %s1416_s28 }
  0x37   : > { %p44_p6 = scmp.eq.s32.totalorder %s1424_s30, 0  ;;  %p1116_p10 = scmp.lt.s32.totalorder %s1424_s30, 2 }
  0x38   : > { %s1580_s24 = scalar_select %p34_p1, %s1420_s29, %s36_s18  }
  0x39   : > { %p45_p3 = por %p44_p6, %p43_p2  ;;  %p1917_p5 = scmp.eq.s32.totalorder %s1503_s9, 1 }
  0x3a   : > { %1916 = sst [smem:[#allocation23_spill]] %s1580_s24  ;;  %s1885_s10 = sand.u32 1, %s1420_s29  }
  0x3b   : > { %p1584_p7 = por %p1917_p5, %p43_p2  ;;  %s1590_s14 = sshll.u32 %s1424_s30, 7 }
  0x3c   : > { %s1594_s17 = sshll.u32 %s1885_s10, 3  ;;  %p1596_p9 = pnand %p1116_p10, %p45_p3 }
  0x3d   : > { %s1918_s26 = scalar_select %p1584_p7, 1, 0 }
  0x3e   : > { %s1920_s15 = scalar_select %p1596_p9, 1, 0 }
  0x3f   : > { %1919 = sst [smem:[#allocation24_spill]] %s1918_s26  ;;  %s319_s18 = sand.u32 1, %s1424_s30  }
  0x40   : > { %s1921_s1 = sld [smem:[#allocation25_spill]]  ;;  %s323_s20 = scalar_lea.vmem [#allocation5], %s1594_s17 }
  0x41   : > { %s330_s21 = sshll.u32 %s323_s20, 4  ;;  %s1610_s10 = scalar_lea.sflag [#allocation6], %s319_s18  ;;  %s1608_s21 = int_to_ptr.vmem [resolvable:$true] %s330_s21 }
  0x42   : > { %p1616_p0 = pneg %p1596_p9 }
  0x44   : > { %s1922_s24 = scalar_select %p1616_p0, 1, 0 }
  0x46   : > { %s1605_s23 = scalar_lea.hbm %s1921_s1, %s1590_s14  ;;  %s1205_s30 = scalar_lea.hbm %s1921_s1, 256 }
  0x47   : > { %s1200_s3 = scalar_lea.hbm %s1605_s23, 128  ;;  %p1206_p6 = scmp.lt.u32.totalorder %s1605_s23, %s1921_s1 }
  0x48   : > { %p1201_p12 = scmp.ne.s32.totalorder %s1605_s23, %s1200_s3  ;;  %p1207_p10 = scmp.lt.u32.totalorder %s1205_s30, %s1200_s3 }
  0x49   : > { %p1209_p5 = scmp.lt.u32.totalorder %s1200_s3, %s1605_s23 }
  0x4a   : > { %p1203_p1 = pnand %p1616_p0, %p1201_p12  ;;  %p1208_p3 = por %p1207_p10, %p1206_p6 }
  0x4c   : > { %p1204_p2 = pneg %p1203_p1  ;;  %p1210_p7 = por %p1209_p5, %p1208_p3 }
  0x4e   : > { %p1211_p4 = pnand %p1210_p7, %p1204_p2 }
  0x50   : > { %1214 = shalt.err (!%p1211_p4)
}
  0x51   : > { %s1215_s18 = scalar_lea.vmem %s1608_s21, 128  ;;  %s1429_s19 = smov [#allocation5]  }
  0x52   : > { %p1216_p12 = scmp.ne.s32.totalorder %s1608_s21, %s1215_s18  ;;  %s1220_s22 = sshll.u32 %s1429_s19, 4  ;;  %s1221_s22 = int_to_ptr.vmem [resolvable:$false] %s1220_s22 }
  0x53   : > { %s1222_s12 = scalar_lea.vmem %s1221_s22, 256  ;;  %p1223_p11 = scmp.lt.s32.totalorder %s1608_s21, %s1221_s22 }
  0x54   : > { %p1218_p1 = pnand %p1216_p12, %p1616_p0  ;;  %p1224_p13 = scmp.lt.s32.totalorder %s1222_s12, %s1215_s18 }
  0x56   : > { %p1219_p8 = pneg %p1218_p1  ;;  %p1225_p6 = por %p1224_p13, %p1223_p11 }
  0x58   : > { %p1226_p10 = pnand %p1225_p6, %p1219_p8 }
  0x5a   : > { %1229 = shalt.err (!%p1226_p10)
}
  0x5b   : > { %1105 = dma.hbm_to_vmem [thread:$0]  (!%p1596_p9), %s1605_s23, 128, %s1608_s21, %s1610_s10  }
  0x5c   : > { %s1430_s3 = smov [#allocation10]   ;;  %s1431_s20 = smov [#allocation11]  }
  0x5d   : > { %s268_s30 = sshll.u32 %s1430_s3, 4  ;;  %s284_s1 = sshll.u32 %s1431_s20, 4  ;;  %s269_s30 = int_to_ptr.vmem [resolvable:$true] %s268_s30  ;;  %s285_s1 = int_to_ptr.vmem [resolvable:$true] %s284_s1 }
  0x5e   : > { %s1230_s22 = scalar_lea.hbm %s1873_s4, 256  ;;  %p1923_p8 = scmp.ne.s32.totalorder %s1915_s25, 0 }
  0x5f   : > { %p1231_p4 = scmp.ne.s32.totalorder %s1873_s4, %s1230_s22  ;;  %p1237_p7 = scmp.lt.u32.totalorder %s1230_s22, %s1873_s4 }
  0x61   : > { %p1233_p11 = pnand %p1231_p4, %p1923_p8 }
  0x63   : > { %p1234_p13 = pneg %p1233_p11 }
  0x65   : > { %p1239_p2 = pnand %p1237_p7, %p1234_p13 }
  0x67   : > { %1242 = shalt.err (!%p1239_p2)
}
  0x68   : > { %s1243_s21 = scalar_lea.vmem %s269_s30, 256  ;;  %p1251_p1 = scmp.lt.s32.totalorder %s269_s30, %s269_s30 }
  0x69   : > { %p1244_p3 = scmp.ne.s32.totalorder %s269_s30, %s1243_s21  ;;  %p1252_p6 = scmp.lt.s32.totalorder %s1243_s21, %s1243_s21 }
  0x6b   : > { %p1246_p5 = pnand %p1244_p3, %p1923_p8  ;;  %p1253_p10 = por %p1252_p6, %p1251_p1 }
  0x6d   : > { %p1247_p12 = pneg %p1246_p5 }
  0x6f   : > { %p1254_p9 = pnand %p1253_p10, %p1247_p12 }
  0x71   : > { %1257 = shalt.err (!%p1254_p9)
}
  0x72   : > { %p1924_p4 = scmp.ne.s32.totalorder %s1912_s16, 0  ;;  %s1925_s27 = smov 4  }
  0x73   : > { %s1926_s23 = smov 64   ;;  %s1258_s19 = scalar_lea.hbm %s1875_s6, 256 }
  0x74   : > { %1095 = dma.hbm_to_vmem [thread:$0]  (!%p1924_p4), %s1873_s4, 256, %s269_s30, [#allocation9], %s1926_s23, %s1926_s23, %s1925_s27  }
  0x75   : > { %p1259_p11 = scmp.ne.s32.totalorder %s1875_s6, %s1258_s19  ;;  %p1265_p7 = scmp.lt.u32.totalorder %s1258_s19, %s1875_s6 }
  0x77   : > { %p1261_p9 = pnand %p1259_p11, %p1923_p8 }
  0x79   : > { %p1262_p13 = pneg %p1261_p9 }
  0x7b   : > { %p1267_p2 = pnand %p1265_p7, %p1262_p13 }
  0x7d   : > { %1270 = shalt.err (!%p1267_p2)
}
  0x7e   : > { %s1271_s8 = scalar_lea.vmem %s285_s1, 256  ;;  %p1279_p1 = scmp.lt.s32.totalorder %s285_s1, %s285_s1 }
  0x7f   : > { %p1272_p3 = scmp.ne.s32.totalorder %s285_s1, %s1271_s8  ;;  %p1280_p6 = scmp.lt.s32.totalorder %s1271_s8, %s1271_s8 }
  0x81   : > { %p1274_p5 = pnand %p1272_p3, %p1923_p8  ;;  %p1281_p10 = por %p1280_p6, %p1279_p1 }
  0x83   : > { %p1275_p12 = pneg %p1274_p5 }
  0x85   : > { %p1282_p0 = pnand %p1281_p10, %p1275_p12 }
  0x87   : > { %1285 = shalt.err (!%p1282_p0)
}
  0x88   : > { %1098 = dma.hbm_to_vmem [thread:$0]  (!%p1924_p4), %s1875_s6, 256, %s285_s1, [#allocation12], %s1926_s23, %s1926_s23, %s1925_s27  }
  0x89   : > { %s1686_s20 = scalar_lea.hbm %s1869_s0, %s1590_s14  ;;  %s305_s16 = scalar_lea.vmem [#allocation2], %s1594_s17 }
  0x8a   : > { %s312_s19 = sshll.u32 %s305_s16, 4  ;;  %s1695_s12 = scalar_lea.hbm %s1871_s2, %s1590_s14  ;;  %s1689_s19 = int_to_ptr.vmem [resolvable:$true] %s312_s19 }
  0x8b   : > { %s1927_s21 = sand.u32 1, %s1420_s29   ;;  %s1286_s27 = scalar_lea.hbm %s1686_s20, 128 }
  0x8c   : > { %s302_s1 = scalar_lea.sflag [#allocation3], %s1927_s21  ;;  %p1287_p0 = scmp.ne.s32.totalorder %s1686_s20, %s1286_s27 }
  0x8d   : > { %p1928_p8 = scmp.ne.s32.totalorder %s1922_s24, 0  ;;  %s1291_s30 = scalar_lea.hbm %s1869_s0, 256 }
  0x8e   : > { %p1292_p9 = scmp.lt.u32.totalorder %s1686_s20, %s1869_s0  ;;  %p1293_p13 = scmp.lt.u32.totalorder %s1291_s30, %s1286_s27 }
  0x8f   : > { %p1289_p4 = pnand %p1287_p0, %p1928_p8  ;;  %p1295_p2 = scmp.lt.u32.totalorder %s1286_s27, %s1686_s20 }
  0x90   : > { %p1294_p7 = por %p1293_p13, %p1292_p9 }
  0x91   : > { %p1290_p11 = pneg %p1289_p4 }
  0x92   : > { %p1296_p3 = por %p1295_p2, %p1294_p7 }
  0x94   : > { %p1297_p5 = pnand %p1296_p3, %p1290_p11 }
  0x96   : > { %1300 = shalt.err (!%p1297_p5)
}
  0x97   : > { %s1301_s14 = scalar_lea.vmem %s1689_s19, 128  ;;  %s1432_s3 = smov [#allocation2]  }
  0x98   : > { %p1302_p12 = scmp.ne.s32.totalorder %s1689_s19, %s1301_s14  ;;  %s1306_s16 = sshll.u32 %s1432_s3, 4  ;;  %s1307_s16 = int_to_ptr.vmem [resolvable:$false] %s1306_s16 }
  0x99   : > { %s1308_s22 = scalar_lea.vmem %s1307_s16, 256  ;;  %p1309_p10 = scmp.lt.s32.totalorder %s1689_s19, %s1307_s16 }
  0x9a   : > { %p1304_p1 = pnand %p1302_p12, %p1928_p8  ;;  %p1310_p0 = scmp.lt.s32.totalorder %s1308_s22, %s1301_s14 }
  0x9c   : > { %p1305_p6 = pneg %p1304_p1  ;;  %p1311_p4 = por %p1310_p0, %p1309_p10 }
  0x9e   : > { %p1312_p9 = pnand %p1311_p4, %p1305_p6 }
  0xa0   : > { %1315 = shalt.err (!%p1312_p9)
}
  0xa1   : > { %p1929_p11 = scmp.ne.s32.totalorder %s1920_s15, 0  ;;  %s341_s18 = scalar_lea.vmem [#allocation7], %s1594_s17 }
  0xa2   : > { %s348_s21 = sshll.u32 %s341_s18, 4  ;;  %s1316_s27 = scalar_lea.hbm %s1695_s12, 128  ;;  %s349_s21 = int_to_ptr.vmem [resolvable:$true] %s348_s21 }
  0xa3   : > { %1102 = dma.hbm_to_vmem [thread:$0]  (!%p1929_p11), %s1686_s20, 128, %s1689_s19, %s302_s1  }
  0xa4   : > { %p1317_p13 = scmp.ne.s32.totalorder %s1695_s12, %s1316_s27  ;;  %s1321_s30 = scalar_lea.hbm %s1871_s2, 256 }
  0xa5   : > { %p1322_p3 = scmp.lt.u32.totalorder %s1695_s12, %s1871_s2  ;;  %p1323_p5 = scmp.lt.u32.totalorder %s1321_s30, %s1316_s27 }
  0xa6   : > { %p1319_p7 = pnand %p1317_p13, %p1928_p8  ;;  %p1325_p1 = scmp.lt.u32.totalorder %s1316_s27, %s1695_s12 }
  0xa7   : > { %p1324_p12 = por %p1323_p5, %p1322_p3 }
  0xa8   : > { %p1320_p2 = pneg %p1319_p7 }
  0xa9   : > { %p1326_p6 = por %p1325_p1, %p1324_p12 }
  0xab   : > { %p1327_p10 = pnand %p1326_p6, %p1320_p2 }
  0xad   : > { %1330 = shalt.err (!%p1327_p10)
}
  0xae   : > { %s1331_s17 = scalar_lea.vmem %s349_s21, 128  ;;  %s1433_s20 = smov [#allocation7]  }
  0xaf   : > { %p1332_p0 = scmp.ne.s32.totalorder %s349_s21, %s1331_s17  ;;  %s1336_s19 = sshll.u32 %s1433_s20, 4  ;;  %s1337_s19 = int_to_ptr.vmem [resolvable:$false] %s1336_s19 }
  0xb0   : > { %s1338_s1 = scalar_lea.vmem %s1337_s19, 256  ;;  %p1339_p13 = scmp.lt.s32.totalorder %s349_s21, %s1337_s19 }
  0xb1   : > { %p1334_p4 = pnand %p1332_p0, %p1928_p8  ;;  %p1340_p7 = scmp.lt.s32.totalorder %s1338_s1, %s1331_s17 }
  0xb3   : > { %p1335_p9 = pneg %p1334_p4  ;;  %p1341_p11 = por %p1340_p7, %p1339_p13 }
  0xb5   : > { %p1342_p3 = pnand %p1341_p11, %p1335_p9 }
  0xb7   : > { %1345 = shalt.err (!%p1342_p3)
}
  0xb8   : > { %p1930_p5 = scmp.ne.s32.totalorder %s1920_s15, 0  ;;  %p1931_p2 = scmp.ne.s32.totalorder %s1911_s13, 0 }
  0xb9   : > { %s1742_s24 = sand.u32 (!%p1931_p2), 1, %s1416_s28   ;;  %p1932_p8 = scmp.ne.s32.totalorder (!%p1931_p2), %s1908_s11, 0 }
  0xba   : > { %1108 = dma.hbm_to_vmem [thread:$0]  (!%p1930_p5), %s1695_s12, 128, %s349_s21, %s1610_s10  }
  0xbb   : > { %357 = sbr.rel (%p1931_p2) target bundleno = 1254 (0x4e6), region = 52  ;;  %s1745_s14 = sshll.u32 (!%p1931_p2), %s1742_s24, 3 }
  0xbc   : > { %s360_s3 = scalar_lea.sflag (!%p1931_p2), [#allocation3], %s1742_s24  ;;  %s363_s16 = scalar_lea.vmem (!%p1931_p2), [#allocation2], %s1745_s14 }
  0xc2   : > { %1391 = dma.done.wait (%p1932_p8), %s360_s3, 128  }
  0xc3   : > { %1393 = vsyncadd (%p1932_p8), %s360_s3, 4294967168  ;;  %s368_s13 = sand.u32 1, %s1503_s9   ;;  %s372_s15 = scalar_lea.vmem [#allocation5], %s1745_s14 }
  0xc4   : > { %s369_s10 = scalar_lea.sflag [#allocation6], %s368_s13 }
  0xc5   : > { %1395 = dma.done.wait (%p1932_p8), %s369_s10, 256  }
  0xc6   : > { %1397 = vsyncadd (%p1932_p8), %s369_s10, 4294967040  ;;  %s381_s12 = scalar_lea.vmem [#allocation7], %s1745_s14  ;;  %p1933_p11 = scmp.eq.s32.totalorder %s1503_s9, 0 }
  0xc8   : > { %1399 = dma.done.wait (%p1933_p11), [#allocation9], 512   ;;  %p1934_p12 = pmov %p1933_p11 }
  0xc9   : > { %p1935_p1 = pmov %p1933_p11 }
  0xca   : > { %1401 = vsyncadd (%p1934_p12), [#allocation9], 4294966784 }
  0xcb   : > { %1403 = dma.done.wait (%p1935_p1), [#allocation12], 256   ;;  %p1936_p6 = pmov %p1935_p1 }
  0xcc   : > { %v1434_v0 = vmov 0.0   ;;  %vm1435_vm0 = vmmov 0   ;;  %v1160_v1 = vld [vmem:[#allocation10] sm:$0xff]   ;;  %v1161_v2 = vld [vmem:[#allocation10 + $0x8] sm:$0xff]   ;;  %v1162_v3 = vld [vmem:[#allocation8] sm:$0xff]   ;;  %vm479_vm1 = vcmask 261120  }
  0xcd   : > { %1405 = vsyncadd (%p1936_p6), [#allocation12], 4294967040  ;;  %1033 = vmatprep.subr.bf16.mxu1 %v1434_v0  ;;  %1025 = vmatprep.subr.bf16.mxu0 %v1434_v0  ;;  %v439_v4 = vld [vmem:[%s372_s15] sm:$0xff]  ;;  %v437_v6 = vld [vmem:[%s363_s16] sm:$0xff]  ;;  %vm690_vm2 = vcmask 64512   ;;  %vm704_vm3 = vcmask 1043456  }
  0xce   : > { %1037 = vmatprep.mubr.msk.bf16.mxu1 %vm1435_vm0, %v1434_v0  ;;  %1029 = vmatprep.mubr.msk.bf16.mxu0 %vm1435_vm0, %v1434_v0  ;;  %v1163_v5 = vld [vmem:[#allocation8 + $0x8] sm:$0xff]   ;;  %v440_v7 = vpack.c.bf16 %v439_v4, %v439_v4  ;;  %v438_v8 = vpack.c.bf16 %v437_v6, %v437_v6  ;;  %v1164_v9 = vld [vmem:[%s1874_s5] sm:$0xff]   ;;  %v1165_v10 = vld [vmem:[%s1874_s5 + $0x8] sm:$0xff]   ;;  %s1937_s19 = sld [smem:[#allocation24_spill]]  ;;  %s1006_s1 = sshll.u32 %s1503_s9, 7 }
  0xcf   : > { %1034 = vmatpush3.bf16.msra.mxu1 %v1160_v1  ;;  %1026 = vmatpush3.bf16.msra.mxu0 %v1162_v3  ;;  %v441_v11 = vld [vmem:[%s381_s12] sm:$0xff]  ;;  %v1166_v47 = vld [vmem:[#allocation11] sm:$0xff]   ;;  %v1167_v48 = vld [vmem:[#allocation11 + $0x8] sm:$0xff]   ;;  %s435_s3 = scalar_lea.vmem [#allocation13], %s1745_s14  ;;  %s1938_s15 = sld [smem:[#allocation27_spill]] }
  0xd0   : > { %1035 = vmatprep.subr.bf16.mxu1 %v1434_v0  ;;  %1027 = vmatprep.subr.bf16.mxu0 %v1434_v0  ;;  %v442_v12 = vpack.c.bf16 %v441_v11, %v441_v11  ;;  %v991_v13 = vld [vmem:[%s1876_s7 + $0x1] ss:$0 sm:$0xff]  ;;  %v987_v18 = vld [vmem:[%s1876_s7] ss:$0 sm:$0xff]  ;;  %v995_v33 = vld [vmem:[%s1876_s7 + $0x2] ss:$0 sm:$0xff] }
  0xd1   : > { %v1001_v57 = vld [vmem:[%s1876_s7 + $0x3] ss:$0 sm:$0xff]  ;;  %s825_s16 = sshll.u32 %s435_s3, 4  ;;  %s812_s9 = scalar_lea.sflag [#allocation4], %s1742_s24  ;;  %s1826_s16 = int_to_ptr.vmem [resolvable:$true] %s825_s16 }
  0xd2   : > { %s1346_s14 = scalar_lea.vmem %s1826_s16, 128  ;;  %s1436_s11 = smov [#allocation13]  }
  0xd3   : > { %1036 = vmatpush3.bf16.msra.mxu1 %v1161_v2  ;;  %1028 = vmatpush3.bf16.msra.mxu0 %v1163_v5  ;;  %p1347_p10 = scmp.ne.s32.totalorder %s1826_s16, %s1346_s14  ;;  %s1350_s22 = sshll.u32 %s1436_s11, 4  ;;  %s1351_s22 = int_to_ptr.vmem [resolvable:$false] %s1350_s22 }
  0xd4   : > { %1049 = vmatprep.subr.bf16.mxu1 %v1434_v0  ;;  %1041 = vmatprep.subr.bf16.mxu0 %v1434_v0  ;;  %p1939_p0 = scmp.ne.s32.totalorder %s1937_s19, 0  ;;  %s1352_s18 = scalar_lea.vmem %s1351_s22, 256 }
  0xd5   : > { %s1824_s12 = scalar_lea.hbm %s1938_s15, %s1006_s1  ;;  %p1353_p13 = scmp.lt.s32.totalorder %s1826_s16, %s1351_s22 }
  0xd6   : > { %1038 = vmatmul.mubr.msk.bf16.vlgmr.msra.gmra.mrb[0].mxu1 %vm479_vm1, %v440_v7  ;;  %1030 = vmatmul.mubr.msk.bf16.vlgmr.msra.gmra.mrb[0].mxu0 %vm479_vm1, %v438_v8  ;;  %p1348_p4 = pnand %p1347_p10, %p1939_p0  ;;  %p1354_p7 = scmp.lt.s32.totalorder %s1352_s18, %s1346_s14 }
  0xd7   : > { %1051 = vmatprep.mubr.msk.bf16.mxu1 %vm1435_vm0, %v1434_v0  ;;  %1045 = vmatprep.mubr.msk.bf16.mxu0 %vm1435_vm0, %v1434_v0 }
  0xd8   : > { %1042 = vmatpush3.bf16.msra.mxu0 %v1164_v9  ;;  %p1349_p9 = pneg %p1348_p4  ;;  %p1355_p3 = por %p1354_p7, %p1353_p13 }
  0xd9   : > { %1043 = vmatprep.subr.bf16.mxu0 %v1434_v0 }
  0xda   : > { %p1356_p5 = pnand %p1355_p3, %p1349_p9 }
  0xdc   : > { %1044 = vmatpush3.bf16.msra.mxu0 %v1165_v10 }
  0xdd   : > { %1055 = vmatprep.subr.bf16.mxu0 %v1434_v0 }
  0xdf   : > { %1046 = vmatmul.mubr.msk.bf16.vlgmr.msra.gmra.mrb[4].mxu0 %vm479_vm1, %v442_v12 }
  0xe0   : > { %1057 = vmatprep.mubr.msk.bf16.mxu0 %vm1435_vm0, %v1434_v0 }
 0x1a9   : > { %v576_v14 = vpop.f32.mrb[0].mxu1  ;;  %v517_v19 = vpop.f32.mrb[0].mxu0 }
 0x1aa   : > { %v577_v15 = vadd.f32 %v991_v13, %v576_v14  ;;  %v1039_v16 = vpop.f32.mrb[1].mxu1  ;;  %v1031_v22 = vpop.f32.mrb[1].mxu0  ;;  %v518_v25 = vadd.f32 %v987_v18, %v517_v19 }
 0x1ab   : > { %v579_v17 = vpop.f32.mrb[2].mxu1  ;;  %v520_v23 = vpop.f32.mrb[2].mxu0 }
 0x1ac   : > { %v642_v20 = vpack.c.bf16 %v577_v15, %v577_v15  ;;  %v1040_v21 = vpop.f32.mrb[3].mxu1  ;;  %v1032_v26 = vpop.f32.mrb[3].mxu0  ;;  %v641_v27 = vpack.c.bf16 %v518_v25, %v518_v25 }
 0x1ae   : > { %v648_v24 = vsel %vm479_vm1, %v642_v20, 0 }
 0x1af   : > { %1050 = vmatpush3.bf16.xpose.msra.mxu1 %v648_v24 }
 0x1b0   : > { %1061 = vmatprep.subr.bf16.mxu1 %v1434_v0 }
 0x1b2   : > { %v635_v34 = vpop.f32.mrb[4].mxu0 }
 0x1b3   : > { %v636_v35 = vadd.f32 %v995_v33, %v635_v34  ;;  %v1047_v36 = vpop.f32.mrb[5].mxu0 }
 0x1b4   : > { %v638_v37 = vpop.f32.mrb[6].mxu0 }
 0x1b5   : > { %v643_v38 = vpack.c.bf16 %v636_v35, %v636_v35  ;;  %v1048_v39 = vpop.f32.mrb[7].mxu0 }
 0x1b6   : > { %1052 = vmatmul.mubr.msk.bf16.vlgmr.msra.gmra.mrb[4].mxu1 %vm479_vm1, %v641_v27 }
 0x1b7   : > { %1065 = vmatprep.mubr.msk.bf16.mxu1 %vm1435_vm0, %v1434_v0  ;;  %v706_v40 = vsel %vm704_vm3, %v643_v38, 0  ;;  %1062 = vmatpush3.bf16.msra.mxu1 %v1166_v47 }
 0x1b8   : > { %1056 = vmatpush3.bf16.msra.mxu0 %v706_v40  ;;  %1063 = vmatprep.subr.bf16.mxu1 %v1434_v0 }
 0x1bb   : > { %1064 = vmatpush3.bf16.msra.mxu1 %v1167_v48 }
 0x289   : > { %v684_v28 = vpop.f32.mrb[4].mxu1 }
 0x28a   : > { %v1053_v29 = vpop.f32.mrb[5].mxu1  ;;  %v691_v30 = vsel %vm690_vm2, %v684_v28, -inf }
 0x28b   : > { %692 = vmax.xlane.f32.xlu0 %v691_v30  ;;  %v687_v31 = vpop.f32.mrb[6].mxu1 }
 0x28c   : > { %v1054_v32 = vpop.f32.mrb[7].mxu1 }
 0x318   : > { %v693_v41 = vpop.xlane.xlu0 %692 }
 0x319   : > { %v694_v42 = vsub.f32 %v684_v28, %v693_v41 }
 0x31b   : > { %v695_v43 = vmul.f32 1.442695, %v694_v42 }
 0x31d   : > { %1168 = vpow2.f32 %v695_v43 }
 0x327   : > { %v1169_v44 = vpop.eup %1168 }
 0x328   : > { %v697_v45 = vsel %vm690_vm2, %v1169_v44, 0.0  ;;  %v700_v46 = vpack.c.bf16 %v1169_v44, %v1169_v44 }
 0x329   : > { %698 = vadd.xlane.f32.xlu0 %v697_v45 }
 0x32a   : > { %1058 = vmatmul.mubr.msk.bf16.vlgmr.msra.gmra.mrb[8].mxu0 %vm690_vm2, %v700_v46 }
 0x3b6   : > { %v699_v49 = vpop.xlane.xlu0 %698 }
 0x3b7   : > { %1170 = vrcp.f32 %v699_v49 }
 0x3c1   : > { %v1171_v50 = vpop.eup %1170 }
 0x3fd   : > { %v742_v51 = vpop.f32.mrb[8].mxu0 }
 0x3fe   : > { %v749_v52 = vmul.f32 %v1171_v50, %v742_v51  ;;  %v1059_v53 = vpop.f32.mrb[9].mxu0 }
 0x3ff   : > { %v745_v54 = vpop.f32.mrb[10].mxu0 }
 0x400   : > { %v750_v55 = vpack.c.bf16 %v749_v52, %v749_v52  ;;  %v1060_v56 = vpop.f32.mrb[11].mxu0 }
 0x402   : > { %1066 = vmatmul.mubr.msk.bf16.vlgmr.msra.gmra.mrb[8].mxu1 %vm479_vm1, %v750_v55 }
 0x4d5   : > { %v804_v58 = vpop.f32.mrb[8].mxu1 }
 0x4d6   : > { %v805_v59 = vadd.f32 %v1001_v57, %v804_v58  ;;  %v1067_v60 = vpop.f32.mrb[9].mxu1 }
 0x4d7   : > { %v807_v61 = vpop.f32.mrb[10].mxu1 }
 0x4d8   : > { %v1068_v62 = vpop.f32.mrb[11].mxu1  ;;  %810 = vst.msk [vmem:[%s435_s3] sm:$0xff] %vm479_vm1, %v805_v59 }
 0x4d9   : > { %1359 = shalt.err (!%p1356_p5)
}
 0x4da   : > { %s1360_s24 = scalar_lea.hbm %s1824_s12, 128  ;;  %s1364_s23 = scalar_lea.hbm %s1938_s15, 256 }
 0x4db   : > { %p1361_p2 = scmp.ne.s32.totalorder %s1824_s12, %s1360_s24  ;;  %p1365_p12 = scmp.lt.u32.totalorder %s1824_s12, %s1938_s15 }
 0x4dc   : > { %p1366_p1 = scmp.lt.u32.totalorder %s1364_s23, %s1360_s24  ;;  %p1368_p10 = scmp.lt.u32.totalorder %s1360_s24, %s1824_s12 }
 0x4dd   : > { %p1362_p8 = pnand %p1361_p2, %p1939_p0 }
 0x4de   : > { %p1367_p6 = por %p1366_p1, %p1365_p12 }
 0x4df   : > { %p1363_p11 = pneg %p1362_p8 }
 0x4e0   : > { %p1369_p4 = por %p1368_p10, %p1367_p6 }
 0x4e2   : > { %p1370_p9 = pnand %p1369_p4, %p1363_p11 }
 0x4e4   : > { %1373 = shalt.err (!%p1370_p9)
}
 0x4e5   : > { %1087 = dma.vmem_to_hbm [thread:$0]  (%p1939_p0), %s1826_s16, 128, %s1824_s12, %s812_s9  }
 0x4e6 PF: > { %s1940_s26 = sld [smem:[#allocation19_spill]]  ;;  %s1941_s25 = sld [smem:[#allocation21_spill]] }
 0x4e7   : > { %s1942_s17 = sld [smem:[#allocation20_spill]] }
 0x4ec   : > { %s837_s20 = sand.u32 1, %s1940_s26   ;;  %p1943_p13 = scmp.ne.s32.totalorder %s1941_s25, 0 }
 0x4ed   : > { %p1944_p7 = scmp.ge.s32.totalorder %s1942_s17, 2  ;;  %s838_s1 = scalar_lea.sflag [#allocation4], %s837_s20 }
 0x4ef   : > { %p1110_p3 = pnand %p1944_p7, %p1943_p13 }
 0x4f1   : > { %1407 = dma.done.wait (!%p1110_p3), %s838_s1, 128  }
 0x4f2   : > { %1409 = vsyncadd (!%p1110_p3), %s838_s1, 4294967168  ;;  %s1945_s30 = sld [smem:[#allocation22_spill]]  ;;  %s1946_s3 = sld [smem:[#allocation23_spill]] }
 0x4f3   : > { %s1947_s27 = smov %s1416_s28  ;;  %s1948_s28 = smov %s1420_s29 }
 0x4f8   : > { %p26_p5 = scmp.ge.s32.totalorder %s1945_s30, 4   ;;  %s1949_s29 = smov %s1946_s3 }
 0x4fa   :  { %28 = sbr.rel (!%p26_p5) target bundleno = 13 (0xd), region = 133 }
 0x501   :  { %843 = vsyncpa [#allocation3], 1 }
 0x502   :  { %845 = vsyncpa [#allocation3 + $0x1], 1 }
 0x503   :  { %846 = vsyncpa [#allocation6], 1 }
 0x504   :  { %848 = vsyncpa [#allocation6 + $0x1], 1 }
 0x505   :  { %849 = vsyncpa [#allocation9], 1 }
 0x506   :  { %850 = vsyncpa [#allocation12], 1 }
 0x507   :  { %851 = vsyncpa [#allocation4], 1 }
 0x508   :  { %853 = vsyncpa [#allocation4 + $0x1], 1 }

</bundles_post_ra>
